<compile_context>
chip_gen: v7x
topology: tpu7x:2x2x1
jax: 0.10.0
libtpu: 0.0.40
codegen_flags: <defaults>
</compile_context>

<pallas_src>
import jax
import jax.numpy as jnp
from jax.experimental import pallas as pl
from jax.experimental.pallas import tpu as pltpu

WINDOW_SIZE = 30


def _linear_kernel(xt_ref, w_ref, b_ref, o_ref):
    # xt_ref: (W, TILE_B) f32 -- batch on lanes (dense), window on sublanes.
    # w_ref:  (W, 1)      f32 -- weight column, lane-broadcast by the VPU.
    # b_ref:  (1,)        f32 in SMEM -- scalar bias.
    # o_ref:  (1, TILE_B) f32 -- lane-dense output row.
    prod = xt_ref[...] * w_ref[...]               # VPU elementwise (lane bcast)
    acc = jnp.sum(prod, axis=0, keepdims=True)    # sublane reduce -> (1, TILE_B)
    o_ref[...] = (acc + b_ref[0]).astype(o_ref.dtype)


def _round_up(n, m):
    return ((n + m - 1) // m) * m


def linear_forward_pallas(x, weight, bias, *, tile_b=512):
    """Pallas forward for nn.Linear(window_size, 1).

    x:      (B, W) float32
    weight: (1, W) float32  (PyTorch layout: out_features x in_features)
    bias:   (1,)   float32
    returns (B, 1) float32
    """
    B, W = x.shape

    # Keep tiles a multiple of 128 lanes; don't over-pad small batches.
    tile_b = max(128, min(_round_up(tile_b, 128), _round_up(B, 128)))
    b_pad = _round_up(B, tile_b)

    # Lane-dense presentation: batch on the lane axis.
    # TODO(synk): if the caller can store x pre-transposed (W, B) in HBM, this
    # wrapper-side XLA transpose (one extra pass over x) disappears.
    xt = x.astype(jnp.float32).T                     # (W, B)
    if b_pad != B:
        xt = jnp.pad(xt, ((0, 0), (0, b_pad - B)))   # padded cols sliced off below

    w_col = weight.astype(jnp.float32).T             # (W, 1)
    b_vec = bias.astype(jnp.float32).reshape(1)      # (1,) scalar for SMEM

    out = pl.pallas_call(
        _linear_kernel,
        out_shape=jax.ShapeDtypeStruct((1, b_pad), jnp.float32),
        grid=(b_pad // tile_b,),
        in_specs=[
            pl.BlockSpec((W, tile_b), lambda i: (0, i)),          # x tile (pipelined)
            pl.BlockSpec((W, 1), lambda i: (0, 0)),               # weight (constant block)
            pl.BlockSpec(memory_space=pltpu.MemorySpace.SMEM),    # bias scalar
        ],
        out_specs=pl.BlockSpec((1, tile_b), lambda i: (0, i)),    # lane-dense output row
        compiler_params=pltpu.CompilerParams(
            dimension_semantics=("parallel",),   # v7x: shard B tiles across 2 TCs
        ),
    )(xt, w_col, b_vec)

    return out[0, :B].reshape(B, 1).astype(x.dtype)


def linear_forward(x, weight, bias, *, min_pallas_batch=128):
    """Dispatcher: tiny batches are cheaper as plain fused XLA dot+bias."""
    if x.shape[0] < min_pallas_batch:
        return (x @ weight.T + bias).astype(x.dtype)
    return linear_forward_pallas(x, weight, bias)


if __name__ == "__main__":
    key = jax.random.PRNGKey(0)
    kx, kw, kb = jax.random.split(key, 3)

    # batch=1000 exercises both B-tiling (2 x 512 tiles) and tail padding
    # (1000 -> 1024); padded columns are discarded in the wrapper slice.
    batch = 1000
    weight = jax.random.normal(kw, (1, WINDOW_SIZE), dtype=jnp.float32) * 0.1
    bias = jax.random.normal(kb, (1,), dtype=jnp.float32) * 0.1
    x = jax.random.normal(kx, (batch, WINDOW_SIZE), dtype=jnp.float32)

    out = linear_forward(x, weight, bias)
    out = jax.block_until_ready(out)

    # Reference check in plain JAX (same math as torch.nn.Linear).
    ref = x @ weight.T + bias
    assert out.shape == (batch, 1)
    assert jnp.allclose(out, ref, atol=1e-5, rtol=1e-5), float(
        jnp.max(jnp.abs(out - ref))
    )

    print("KERNEL_OK")
</pallas_src>

<mosaic_0001>
module attributes {stable_mosaic.version = 11 : i64} {
  func.func @_linear_kernel(%arg0: i32, %arg1: memref<30x512xf32, #tpu.memory_space<vmem>>, %arg2: memref<30x1xf32, #tpu.memory_space<vmem>>, %arg3: memref<1xf32, #tpu.memory_space<smem>>, %arg4: memref<1x512xf32, #tpu.memory_space<vmem>>) attributes {dimension_semantics = [#tpu.dimension_semantics<parallel>], iteration_bounds = array<i64: 2>, scalar_prefetch = 0 : i64, scratch_operands = 0 : i64, tpu.core_type = #tpu.core_type<tc>, window_params = [{transform_indices = @transform_0, window_bounds = array<i64: 30, 512>}, {pipeline_mode = #tpu.pipeline_mode<synchronous>, transform_indices = @transform_1, window_bounds = array<i64: 30, 1>}, {transform_indices = @transform_2, window_bounds = array<i64: 1>}, {transform_indices = @transform_3, window_bounds = array<i64: 1, 512>}]} {
    %c0 = arith.constant 0 : index
    %c0_0 = arith.constant 0 : index
    %0 = vector.load %arg1[%c0, %c0_0] : memref<30x512xf32, #tpu.memory_space<vmem>>, vector<30x512xf32>
    %c0_1 = arith.constant 0 : index
    %c0_2 = arith.constant 0 : index
    %1 = vector.load %arg2[%c0_1, %c0_2] : memref<30x1xf32, #tpu.memory_space<vmem>>, vector<30x1xf32>
    %2 = vector.broadcast %1 : vector<30x1xf32> to vector<30x512xf32>
    %3 = arith.mulf %0, %2 : vector<30x512xf32>
    %cst = arith.constant dense<0.000000e+00> : vector<512xf32>
    %4 = vector.multi_reduction <add>, %3, %cst [0] : vector<30x512xf32> to vector<512xf32>
    %5 = vector.shape_cast %4 : vector<512xf32> to vector<1x512xf32>
    %c0_3 = arith.constant 0 : index
    %6 = memref.load %arg3[%c0_3] : memref<1xf32, #tpu.memory_space<smem>>
    %7 = vector.broadcast %6 : f32 to vector<1x512xf32>
    %8 = arith.addf %5, %7 : vector<1x512xf32>
    %c0_4 = arith.constant 0 : index
    %c0_5 = arith.constant 0 : index
    %9 = vector.load %arg4[%c0_4, %c0_5] : memref<1x512xf32, #tpu.memory_space<vmem>>, vector<1x512xf32>
    tpu.vector_store %arg4[%c0_4, %c0_5], %8 {strides = array<i32>} : memref<1x512xf32, #tpu.memory_space<vmem>>, vector<1x512xf32>,
    return
  }
  func.func @transform_0(%arg0: i32) -> (i32, i32) {
    %c0_i32 = arith.constant 0 : i32
    %c0_i32_0 = arith.constant 0 : i32
    return %c0_i32, %arg0 : i32, i32
  }
  func.func @transform_1(%arg0: i32) -> (i32, i32) {
    %c0_i32 = arith.constant 0 : i32
    %c0_i32_0 = arith.constant 0 : i32
    %c0_i32_1 = arith.constant 0 : i32
    return %c0_i32, %c0_i32_0 : i32, i32
  }
  func.func @transform_2(%arg0: i32) -> i32 {
    %c0_i32 = arith.constant 0 : i32
    %c0_i32_0 = arith.constant 0 : i32
    return %c0_i32 : i32
  }
  func.func @transform_3(%arg0: i32) -> (i32, i32) {
    %c0_i32 = arith.constant 0 : i32
    %c0_i32_0 = arith.constant 0 : i32
    return %c0_i32, %arg0 : i32, i32
  }
}

</mosaic_0001>

<bundles_post_ra>
// kernel: tpu_custom_call.1
= control target key start
LH: loop header
LB: loop body
LE: loop exit
PB: predicated region body
PF: predicated region fallthrough
CT: control target
= control target key end

     0   :  { %s808_s0 = inlined_call_operand.hbm [shape: f32[30,1024], index: 0, kind: input, shape index: {}]   ;;  %s809_s1 = inlined_call_operand.vmem [shape: f32[30,1], index: 1, kind: input, shape index: {}]   ;;  %s810_s2 = inlined_call_operand.<no memory space> [shape: f32[1], index: 2, kind: input, shape index: {}]   ;;  %s811_s3 = inlined_call_operand.hbm [shape: f32[1,1024], index: 3, kind: output, shape index: {}]  }
   0x1   :  { %8 = sst [smem:[#allocation2]] %s810_s2 }
   0x2   :  { %9 = vsyncpa [#allocation4], 0 }
   0x3   :  { %11 = vsyncpa [#allocation4 + $0x1], 0 }
   0x4   :  { %12 = vsyncpa [#allocation5], 0 }
   0x5   :  { %14 = vsyncpa [#allocation5 + $0x1], 0  ;;  %s611_s14 = smov 0   ;;  %s613_s15 = smov 0  }
   0x6   :  { %s615_s16 = smov 0   ;;  %s617_s17 = smov 0  }
   0x7 LB: > { %s632_s2 = sadd.s32 4294967295, %s579_s17   ;;  %s414_s18 = sadd.s32 4294967294, %s579_s17   ;;  %s579_s17 = sphi %s617_s17, %s825_s17   ;;  %s575_s16 = sphi %s615_s16, %s824_s16   ;;  %s571_s15 = sphi %s613_s15, %s823_s15   ;;  %s567_s14 = sphi %s611_s14, %s822_s14  }
   0x8   : > { %s636_s19 = sadd.s32 1, %s579_s17   ;;  %s27_s20 = sadd.s32 1, %s575_s16 }
   0x9   : > { %s24_s21 = ssub.s32 %s579_s17, %s636_s19  ;;  %p34_p0 = scmp.ne.s32.totalorder %s575_s16, %s571_s15 }
   0xa   : > { %p25_p1 = scmp.eq.s32.totalorder %s24_s21, 0  ;;  %p35_p2 = scmp.eq.s32.totalorder %s579_s17, 0 }
   0xb   : > { %p40_p3 = scmp.ne.s32.totalorder %s571_s15, %s567_s14  ;;  %p41_p4 = scmp.eq.s32.totalorder %s632_s2, 0 }
   0xc   : > { %s648_s22 = scalar_select %p25_p1, %s575_s16, %s27_s20  }
   0xd   : > { %p650_p5 = por %p35_p2, %p34_p0  ;;  %p654_p6 = por %p41_p4, %p40_p3 }
   0xe   : > { %p106_p7 = scmp.eq.s32.totalorder %s632_s2, 1  ;;  %p112_p8 = scmp.eq.s32.totalorder %s414_s18, 1 }
   0xf   : > { %p442_p10 = scmp.lt.s32.totalorder %s579_s17, 2  ;;  %s138_s27 = sand.u32 1, %s575_s16  }
  0x10   : > { %p661_p11 = por %p106_p7, %p34_p0  ;;  %p665_p12 = por %p112_p8, %p40_p3 }
  0x11   : > { %s428_s28 = sshll.u32 %s579_s17, 9  ;;  %s417_s29 = sshll.u32 %s138_s27, 7 }
  0x12   : > { %s815_s25 = scalar_select %p661_p11, 1, 0 }
  0x13   : > { %s816_s26 = scalar_select %p665_p12, 1, 0 }
  0x14   : > { %s674_s5 = scalar_lea.hbm %s808_s0, %s428_s28  ;;  %s142_s6 = scalar_lea.vmem [#allocation3], %s417_s29 }
  0x15   : > { %s149_s7 = sshll.u32 %s142_s6, 4  ;;  %p678_p13 = pnand %p442_p10, %p650_p5  ;;  %s682_s7 = int_to_ptr.vmem [resolvable:$true] %s149_s7 }
  0x16   : > { %s685_s9 = scalar_lea.sflag [#allocation4], %s138_s27  ;;  %s483_s10 = scalar_lea.hbm %s674_s5, 2048 }
  0x17   : > { %p484_p1 = scmp.ne.s32.totalorder %s674_s5, %s483_s10  ;;  %p485_p2 = pneg %p678_p13 }
  0x18   : > { %s488_s13 = scalar_lea.hbm %s808_s0, 4096  ;;  %p489_p5 = scmp.lt.u32.totalorder %s674_s5, %s808_s0 }
  0x19   : > { %p486_p3 = pnand %p485_p2, %p484_p1  ;;  %p490_p7 = scmp.lt.u32.totalorder %s488_s13, %s483_s10 }
  0x1a   : > { %p492_p10 = scmp.lt.u32.totalorder %s483_s10, %s674_s5 }
  0x1b   : > { %p487_p4 = pneg %p486_p3  ;;  %p491_p8 = por %p490_p7, %p489_p5 }
  0x1d   : > { %p493_p9 = por %p492_p10, %p491_p8 }
  0x1f   : > { %p494_p0 = pnand %p493_p9, %p487_p4 }
  0x21   : > { %497 = shalt.err (!%p494_p0)
}
  0x22   : > { %s498_s21 = scalar_lea.vmem %s682_s7, 2048  ;;  %s581_s23 = smov [#allocation3]  }
  0x23   : > { %p499_p1 = scmp.ne.s32.totalorder %s682_s7, %s498_s21  ;;  %s503_s27 = sshll.u32 %s581_s23, 4  ;;  %s504_s27 = int_to_ptr.vmem [resolvable:$false] %s503_s27 }
  0x24   : > { %s505_s28 = scalar_lea.vmem %s504_s27, 4096  ;;  %p506_p11 = scmp.lt.s32.totalorder %s682_s7, %s504_s27 }
  0x25   : > { %p501_p3 = pnand %p499_p1, %p485_p2  ;;  %p507_p5 = scmp.lt.s32.totalorder %s505_s28, %s498_s21 }
  0x27   : > { %p502_p12 = pneg %p501_p3  ;;  %p508_p7 = por %p507_p5, %p506_p11 }
  0x29   : > { %p509_p8 = pnand %p508_p7, %p502_p12 }
  0x2b   : > { %512 = shalt.err (!%p509_p8)
}
  0x2c   : > { %s582_s29 = smov 1024   ;;  %s583_s30 = smov 512  }
  0x2d   : > { %s584_s4 = smov 32   ;;  %p157_p9 = scmp.lt.s32.totalorder %s579_s17, 3 }
  0x2e   : > { %437 = dma.hbm_to_vmem [thread:$0]  (!%p678_p13), %s674_s5, 2048, %s682_s7, %s685_s9, %s582_s29, %s583_s30, %s584_s4  }
  0x2f   : > { %p818_p0 = scmp.ge.s32.totalorder %s579_s17, 1 }
  0x31   : > { %p158_p2 = pnand %p818_p0, %p157_p9 }
  0x32   : > { %s717_s6 = sand.u32 (!%p158_p2), 1, %s571_s15  }
  0x33   : > { %161 = sbr.rel (%p158_p2) target bundleno = 237 (0xed), region = 32  ;;  %s421_s10 = sshll.u32 (!%p158_p2), %s717_s6, 7 }
  0x34   : > { %s164_s11 = scalar_lea.sflag (!%p158_p2), [#allocation4], %s717_s6  ;;  %s721_s12 = scalar_lea.vmem (!%p158_p2), [#allocation3], %s421_s10 }
  0x3a   : > { %558 = dma.done.wait (%p654_p6), %s164_s11, 2048  }
  0x3b   : > { %560 = vsyncadd (%p654_p6), %s164_s11, 4294965248  ;;  %v585_v0 = vmov 0   ;;  %v210_v1 = vld [vmem:[%s809_s1 + $0x10] sm:$0xff]  ;;  %v208_v2 = vld [vmem:[%s809_s1] sm:$0xff]  ;;  %vm250_vm0 = vcmask 1045504   ;;  %s289_s21 = sld [smem:[#allocation2]] }
  0x3c   : > { %482 = vset.pattern.permute.xlu1 %v585_v0  ;;  %481 = vset.pattern.permute.xlu0 %v585_v0  ;;  %v211_v3 = vld [vmem:[%s809_s1 + $0x18] sm:$0x3f]  ;;  %v209_v4 = vld [vmem:[%s809_s1 + $0x8] sm:$0xff]  ;;  %v200_v5 = vld [vmem:[%s721_s12 + $0x40] sm:$0xff]  ;;  %s422_s23 = sshll.u32 %s717_s6, 2  ;;  %s429_s27 = sshll.u32 %s632_s2, 6 }
  0x3d   : > { %224 = vperm.xlu1 %482, %v210_v1   ;;  %214 = vperm.xlu0 %481, %v208_v2   ;;  %v201_v7 = vld [vmem:[%s721_s12 + $0x48] sm:$0xff]  ;;  %v202_v8 = vld [vmem:[%s721_s12 + $0x50] sm:$0xff]  ;;  %v203_v9 = vld [vmem:[%s721_s12 + $0x58] sm:$0xff]  ;;  %v586_v1 = vmov 1966171168   ;;  %s189_s28 = scalar_lea.vmem [#allocation6], %s422_s23  ;;  %s764_s10 = scalar_lea.hbm %s811_s3, %s429_s27 }
  0x3e   : > { %v192_v11 = vld [vmem:[%s721_s12] sm:$0xff]  ;;  %v193_v12 = vld [vmem:[%s721_s12 + $0x8] sm:$0xff]  ;;  %v194_v13 = vld [vmem:[%s721_s12 + $0x10] sm:$0xff]  ;;  %v302_v2 = vunpack.c.l.s4 %v586_v1  ;;  %s344_s29 = sshll.u32 %s189_s28, 4  ;;  %s330_s11 = scalar_lea.sflag [#allocation5], %s717_s6  ;;  %s766_s29 = int_to_ptr.vmem [resolvable:$true] %s344_s29 }
  0x3f   : > { %v195_v14 = vld [vmem:[%s721_s12 + $0x18] sm:$0xff]  ;;  %v204_v15 = vld [vmem:[%s721_s12 + $0x60] sm:$0x3f]  ;;  %v197_v17 = vld [vmem:[%s721_s12 + $0x28] sm:$0xff]  ;;  %p819_p11 = scmp.ne.s32.totalorder %s815_s25, 0  ;;  %s587_s2 = smov [#allocation6]  }
  0x40   : > { %v196_v16 = vld [vmem:[%s721_s12 + $0x20] sm:$0xff]  ;;  %v198_v18 = vld [vmem:[%s721_s12 + $0x30] sm:$0xff]  ;;  %v199_v19 = vld [vmem:[%s721_s12 + $0x38] sm:$0xff]  ;;  %s517_s5 = sshll.u32 %s587_s2, 4  ;;  %s518_s5 = int_to_ptr.vmem [resolvable:$false] %s517_s5 }
  0x41   : > { %229 = vperm.xlu1 %482, %v211_v3   ;;  %219 = vperm.xlu0 %481, %v209_v4   ;;  %v205_v25 = vld [vmem:[%s721_s12 + $0x68] sm:$0x3f]  ;;  %v206_v26 = vld [vmem:[%s721_s12 + $0x70] sm:$0x3f]  ;;  %v207_v27 = vld [vmem:[%s721_s12 + $0x78] sm:$0x3f]  ;;  %v304_v3 = vlaneseq  ;;  %p520_p4 = scmp.lt.s32.totalorder %s766_s29, %s518_s5 }
  0x42   : > { %s513_s12 = scalar_lea.vmem %s766_s29, 64  ;;  %s519_s7 = scalar_lea.vmem %s518_s5, 128 }
  0x43   : > { %vm326_vm1 = vcmp.lt.s32.totalorder %v304_v3, 512  ;;  %p514_p6 = scmp.ne.s32.totalorder %s766_s29, %s513_s12  ;;  %p521_p10 = scmp.lt.s32.totalorder %s519_s7, %s513_s12 }
  0x45   : > { %p515_p12 = pnand %p514_p6, %p819_p11  ;;  %p522_p1 = por %p521_p10, %p520_p4 }
  0x47   : > { %p516_p13 = pneg %p515_p12 }
  0x49   : > { %p523_p3 = pnand %p522_p1, %p516_p13 }
  0xbc   : > { %v225_v6 = vpop.permute.xlu1 %224  ;;  %v215_v10 = vpop.permute.xlu0 %214 }
  0xbd   : > { %v240_v20 = vmul.f32 %v225_v6, %v200_v5  ;;  %v241_v21 = vmul.f32 %v225_v6, %v201_v7  ;;  %v242_v22 = vmul.f32 %v225_v6, %v202_v8  ;;  %v243_v23 = vmul.f32 %v225_v6, %v203_v9 }
  0xbe   : > { %v232_v29 = vmul.f32 %v215_v10, %v192_v11  ;;  %v233_v30 = vmul.f32 %v215_v10, %v193_v12  ;;  %v234_v31 = vmul.f32 %v215_v10, %v194_v13  ;;  %v235_v32 = vmul.f32 %v215_v10, %v195_v14 }
  0xbf   : > { %v303_v12 = vunpack.c.0.s8 %v302_v2  ;;  %v305_v13 = vshrl.u32 %v304_v3, 7 }
  0xc0   : > { %v230_v24 = vpop.permute.xlu1 %229  ;;  %v220_v28 = vpop.permute.xlu0 %219 }
  0xc1   : > { %v236_v33 = vmul.f32 %v220_v28, %v196_v16  ;;  %v237_v34 = vmul.f32 %v220_v28, %v197_v17  ;;  %v238_v35 = vmul.f32 %v220_v28, %v198_v18  ;;  %v239_v36 = vmul.f32 %v220_v28, %v199_v19 }
  0xc2   : > { %v244_v37 = vmul.f32 %v230_v24, %v204_v15  ;;  %v245_v38 = vmul.f32 %v230_v24, %v205_v25  ;;  %v246_v39 = vmul.f32 %v230_v24, %v206_v26  ;;  %v247_v40 = vmul.f32 %v230_v24, %v207_v27 }
  0xc3   : > { %v248_v41 = vadd.f32 %v236_v33, %v232_v29  ;;  %v259_v42 = vadd.f32 %v237_v34, %v233_v30  ;;  %v269_v43 = vadd.f32 %v238_v35, %v234_v31  ;;  %v279_v44 = vadd.f32 %v239_v36, %v235_v32 }
  0xc4   : > { %v251_v49 = vsel %vm250_vm0, %v244_v37, 0.0  ;;  %v261_v50 = vsel %vm250_vm0, %v245_v38, 0.0  ;;  %v271_v51 = vsel %vm250_vm0, %v246_v39, 0.0  ;;  %v281_v52 = vsel %vm250_vm0, %v247_v40, 0.0 }
  0xc5   : > { %v249_v45 = vadd.f32 %v248_v41, %v240_v20  ;;  %v260_v46 = vadd.f32 %v259_v42, %v241_v21  ;;  %v270_v47 = vadd.f32 %v269_v43, %v242_v22  ;;  %v280_v48 = vadd.f32 %v279_v44, %v243_v23 }
  0xc6   : > { %v290_v18 = vstv %s289_s21  ;;  %v306_v23 = vsub.s32 %v303_v12, %v305_v13 }
  0xc7   : > { %v252_v53 = vadd.f32 %v251_v49, %v249_v45  ;;  %v262_v54 = vadd.f32 %v261_v50, %v260_v46  ;;  %v272_v55 = vadd.f32 %v271_v51, %v270_v47  ;;  %v282_v56 = vadd.f32 %v281_v52, %v280_v48 }
  0xc9   : > { %v253_v57 = vrot.slane %v252_v53, 4  ;;  %v263_v58 = vrot.slane %v262_v54, 4  ;;  %v273_v59 = vrot.slane %v272_v55, 4  ;;  %v283_v60 = vrot.slane %v282_v56, 4 }
  0xcb   : > { %v254_v61 = vadd.f32 %v253_v57, %v252_v53  ;;  %v264_v62 = vadd.f32 %v263_v58, %v262_v54  ;;  %v274_v63 = vadd.f32 %v273_v59, %v272_v55  ;;  %v284_v0 = vadd.f32 %v283_v60, %v282_v56 }
  0xcd   : > { %v255_v4 = vrot.slane %v254_v61, 2  ;;  %v265_v5 = vrot.slane %v264_v62, 2  ;;  %v275_v6 = vrot.slane %v274_v63, 2  ;;  %v285_v7 = vrot.slane %v284_v0, 2 }
  0xcf   : > { %v256_v8 = vadd.f32 %v255_v4, %v254_v61  ;;  %v266_v9 = vadd.f32 %v265_v5, %v264_v62  ;;  %v276_v10 = vadd.f32 %v275_v6, %v274_v63  ;;  %v286_v11 = vadd.f32 %v285_v7, %v284_v0 }
  0xd1   : > { %v257_v14 = vrot.slane %v256_v8, 1  ;;  %v267_v15 = vrot.slane %v266_v9, 1  ;;  %v277_v16 = vrot.slane %v276_v10, 1  ;;  %v287_v17 = vrot.slane %v286_v11, 1 }
  0xd3   : > { %v258_v19 = vadd.f32 %v257_v14, %v256_v8  ;;  %v268_v20 = vadd.f32 %v267_v15, %v266_v9  ;;  %v278_v21 = vadd.f32 %v277_v16, %v276_v10  ;;  %v288_v22 = vadd.f32 %v287_v17, %v286_v11 }
  0xd5   : > { %v291_v24 = vadd.f32 %v290_v18, %v258_v19  ;;  %v292_v25 = vadd.f32 %v290_v18, %v268_v20  ;;  %v293_v26 = vadd.f32 %v290_v18, %v278_v21  ;;  %v294_v27 = vadd.f32 %v290_v18, %v288_v22 }
  0xd7   : > { %v299_v28 = vcombine.low %v291_v24, %v292_v25  ;;  %v300_v29 = vcombine.low %v293_v26, %v294_v27 }
  0xd9   : > { %v307_v30 = vrot.slane %v299_v28, %v306_v23  ;;  %v314_v31 = vrot.slane %v300_v29, %v306_v23 }
  0xdb   : > { %v315_v32 = vcombine.low %v307_v30, %v314_v31 }
  0xdd   : > { %v322_v33 = vrot.slane %v315_v32, %v306_v23 }
  0xdf   : > { %328 = vst.msk [vmem:[%s189_s28] sm:$0xf] %vm326_vm1, %v322_v33 }
  0xe0   : > { %526 = shalt.err (!%p523_p3)
}
  0xe1   : > { %s527_s6 = scalar_lea.hbm %s764_s10, 64  ;;  %s531_s24 = scalar_lea.hbm %s811_s3, 128 }
  0xe2   : > { %p528_p5 = scmp.ne.s32.totalorder %s764_s10, %s527_s6  ;;  %p532_p9 = scmp.lt.u32.totalorder %s764_s10, %s811_s3 }
  0xe3   : > { %p533_p0 = scmp.lt.u32.totalorder %s531_s24, %s527_s6  ;;  %p535_p6 = scmp.lt.u32.totalorder %s527_s6, %s764_s10 }
  0xe4   : > { %p529_p7 = pnand %p528_p5, %p819_p11 }
  0xe5   : > { %p534_p2 = por %p533_p0, %p532_p9 }
  0xe6   : > { %p530_p8 = pneg %p529_p7 }
  0xe7   : > { %p536_p12 = por %p535_p6, %p534_p2 }
  0xe9   : > { %p537_p13 = pnand %p536_p12, %p530_p8 }
  0xeb   : > { %540 = shalt.err (!%p537_p13)
}
  0xec   : > { %432 = dma.vmem_to_hbm [thread:$0]  (%p819_p11), %s766_s29, 64, %s764_s10, %s330_s11  }
  0xed PF: > { %s356_s20 = sand.u32 1, %s567_s14   ;;  %p820_p4 = scmp.ne.s32.totalorder %s816_s26, 0 }
  0xee   : > { %p821_p10 = scmp.ge.s32.totalorder %s579_s17, 2  ;;  %s357_s21 = scalar_lea.sflag [#allocation5], %s356_s20 }
  0xf0   : > { %p439_p1 = pnand %p821_p10, %p820_p4 }
  0xf2   : > { %562 = dma.done.wait (!%p439_p1), %s357_s21, 64  }
  0xf3   : > { %564 = vsyncadd (!%p439_p1), %s357_s21, 4294967232  ;;  %p17_p3 = scmp.ge.s32.totalorder %s636_s19, 4   ;;  %s822_s14 = smov %s571_s15 }
  0xf4   : > { %s823_s15 = smov %s575_s16  ;;  %s824_s16 = smov %s648_s22 }
  0xf5   : > { %s825_s17 = smov %s636_s19  ;;  %19 = sbr.rel (!%p17_p3) target bundleno = 7 (0x7), region = 77 }
  0xfc   :  { %362 = vsyncpa [#allocation4], 1 }
  0xfd   :  { %364 = vsyncpa [#allocation4 + $0x1], 1 }
  0xfe   :  { %365 = vsyncpa [#allocation5], 1 }
  0xff   :  { %367 = vsyncpa [#allocation5 + $0x1], 1 }

</bundles_post_ra>
